<compile_context>
chip_gen: v7x
topology: tpu7x:2x2x1
jax: 0.10.0
libtpu: 0.0.40
codegen_flags: <defaults>
</compile_context>

<pallas_src>
import functools
import math

import jax
import jax.numpy as jnp
from jax import lax
from jax.experimental import pallas as pl
from jax.experimental.pallas import tpu as pltpu

_LANES = 128
_SUBLANES = 8
_TILE_BYTES = 2 * 1024 * 1024          # per output block (x2 buffers ≈ 4 MiB VMEM)
_MAX_PACKED_LANES = 8192               # safety valve for pathological lcm widths
_VMEM_LIMIT_BYTES = 16 * 1024 * 1024   # explicit, <= scoped default on v5e/v6e/v7x


def make_inv_freq(dim: int) -> jnp.ndarray:
    """Matches the PyTorch __init__ verbatim:
        1.0 / (10000 ** torch.arange(0, dim, 2).float() / dim)
    i.e. (10000 ** ar) / dim with ar already float32; 10000**ar overflows to +inf
    for ar >= 10, zeroing those entries.  JAX f32 power overflows identically."""
    ar = jnp.arange(0, dim, 2).astype(jnp.float32)
    return 1.0 / (10000.0 ** ar / dim)


def _cdiv(a: int, b: int) -> int:
    return -(-a // b)


def _round_up(x: int, m: int) -> int:
    return _cdiv(x, m) * m


def _choose_tile_rows(rows: int, lane_width: int) -> int:
    """Row tile: multiple of 8, byte-capped (~2 MiB/block), and >=2 grid steps when
    there is enough work (lets a megacore part split the 'parallel' axis; costs one
    extra ~0.35 us grid step otherwise — negligible)."""
    if rows <= _SUBLANES:
        return rows                                   # single block == full extent
    cap = max(_SUBLANES, (_TILE_BYTES // (lane_width * 4)) // _SUBLANES * _SUBLANES)
    half = _round_up(_cdiv(rows, 2), _SUBLANES)
    return max(_SUBLANES, min(cap, half))


# -----------------------------------------------------------------------------
# Kernels
# -----------------------------------------------------------------------------
def _packed_kernel(freq_row_ref, col_t_ref, out_ref, *, k: int):
    """Lane-dense path.  Output block: (tile_rows, W) slab of the flattened emb.

    freq_row_ref : (1, W) f32  -- inv_freq_full tiled k times  (freq[c % dim])
    col_t_ref    : (1, W) f32  -- c // dim as float (per-lane row offset)
    Flat element (R, c) of the (rows, W) output is emb[R*k + c//dim, c % dim].
    """
    tile_rows = out_ref.shape[0]
    base = (pl.program_id(0) * (tile_rows * k)).astype(jnp.float32)   # scalar
    row_t = base + col_t_ref[...]                    # (1, W), exact f32 integers
    r = lax.broadcasted_iota(jnp.int32, out_ref.shape, 0).astype(jnp.float32)
    # t = R*k + c//dim is an exact integer in f32 (k is a power of two); a single
    # multiply by freq then matches the einsum reference bit-for-bit.
    out_ref[...] = (r * float(k) + row_t) * freq_row_ref[...]


def _rows_kernel(freq_row_ref, out_ref):
    """Fallback path (n not a multiple of the pack factor): (tile_n, dim) blocks.

    freq_row_ref : (1, dim) f32  -- concat([inv_freq, inv_freq])
    """
    base = (pl.program_id(0) * out_ref.shape[0]).astype(jnp.float32)
    t = lax.broadcasted_iota(jnp.int32, out_ref.shape, 0).astype(jnp.float32) + base
    out_ref[...] = t * freq_row_ref[...]


# -----------------------------------------------------------------------------
# pallas_call wrappers (exact output shapes -> no post-kernel slice copies)
# -----------------------------------------------------------------------------
def _packed_pallas(inv_freq_full: jnp.ndarray, n: int, dim: int, k: int) -> jnp.ndarray:
    w = k * dim                          # lcm(dim, 128); always a multiple of 128
    rows = n // k                        # exact: caller guarantees n % k == 0
    tile_rows = _choose_tile_rows(rows, w)
    grid = _cdiv(rows, tile_rows)

    freq_row = jnp.tile(inv_freq_full, k).reshape(1, w)
    col_t = (jnp.arange(w, dtype=jnp.int32) // dim).astype(jnp.float32).reshape(1, w)

    emb_flat = pl.pallas_call(
        functools.partial(_packed_kernel, k=k),
        out_shape=jax.ShapeDtypeStruct((rows, w), jnp.float32),
        grid=(grid,),
        in_specs=[pl.BlockSpec((1, w), lambda i: (0, 0)),
                  pl.BlockSpec((1, w), lambda i: (0, 0))],
        out_specs=pl.BlockSpec((tile_rows, w), lambda i: (i, 0)),
        compiler_params=pltpu.CompilerParams(
            dimension_semantics=("parallel",),
            vmem_limit_bytes=_VMEM_LIMIT_BYTES),
    )(freq_row, col_t)

    # rows * w == n * dim exactly -> pure row-major reinterpretation, no copy.
    return emb_flat.reshape(n, dim)


def _rows_pallas(inv_freq_full: jnp.ndarray, n: int, dim: int) -> jnp.ndarray:
    tile_n = _choose_tile_rows(n, dim)
    grid = _cdiv(n, tile_n)
    freq_row = inv_freq_full.reshape(1, dim)

    return pl.pallas_call(
        _rows_kernel,
        out_shape=jax.ShapeDtypeStruct((n, dim), jnp.float32),   # exact, no slice
        grid=(grid,),
        in_specs=[pl.BlockSpec((1, dim), lambda i: (0, 0))],
        out_specs=pl.BlockSpec((tile_n, dim), lambda i: (i, 0)),
        compiler_params=pltpu.CompilerParams(
            dimension_semantics=("parallel",),
            vmem_limit_bytes=_VMEM_LIMIT_BYTES),
    )(freq_row)


def sinusoidal_embeddings(x: jnp.ndarray, inv_freq: jnp.ndarray,
                          *, min_pallas_elems: int = 0) -> jnp.ndarray:
    """Forward of SinusoidalEmbeddings. Returns (1, n, dim) float32, n = x.shape[-2].

    The result depends only on x.shape[-2]; in production, cache it per (n, dim)
    and/or set min_pallas_elems to skip kernel launch overhead for tiny shapes.
    """
    n = int(x.shape[-2])
    half = int(inv_freq.shape[0])
    dim = 2 * half
    # cat([freqs, freqs], -1) == t[:, None] * cat([inv_freq, inv_freq]); do the
    # concat once on the host so the kernel is a broadcast multiply.
    inv_freq_full = jnp.concatenate([inv_freq, inv_freq]).astype(jnp.float32)

    if n == 0:
        return jnp.zeros((1, 0, dim), jnp.float32)

    if n * dim < min_pallas_elems:       # optional tiny-shape escape hatch
        t = jnp.arange(n, dtype=jnp.float32)
        return (t[:, None] * inv_freq_full[None, :])[None, :, :]

    k = _LANES // math.gcd(dim, _LANES)  # emb rows packed per lcm(dim,128) lanes
    if n % k == 0 and k * dim <= _MAX_PACKED_LANES:
        emb = _packed_pallas(inv_freq_full, n, dim, k)   # lane-dense, exact shape
    else:
        emb = _rows_pallas(inv_freq_full, n, dim)        # exact shape fallback
    return emb[None, :, :]


# -----------------------------------------------------------------------------
if __name__ == "__main__":
    key = jax.random.PRNGKey(0)

    def ref(n, inv_freq):
        t = jnp.arange(n, dtype=jnp.float32)
        f = jnp.einsum("i,j->ij", t, inv_freq)
        return jnp.concatenate([f, f], axis=-1)[None, :, :]

    # Primary small example: x of shape (batch, seq, dim), as in the module forward.
    batch, seq, dim = 2, 8, 32
    x = jax.random.normal(key, (batch, seq, dim), dtype=jnp.float32)
    inv_freq = make_inv_freq(dim)

    out = sinusoidal_embeddings(x, inv_freq)
    jax.block_until_ready(out)

    assert out.shape == (1, seq, dim), out.shape
    assert out.dtype == jnp.float32
    assert jnp.allclose(out, ref(seq, inv_freq), rtol=1e-6, atol=1e-6)

    # Extra small checks: multi-step grids with partial last blocks, lcm packing
    # for dim=96, dim=128 (k=1), and the exact-shape row fallback (n % k != 0).
    for n2, d2 in ((5000, 32), (1000, 64), (40, 96), (129, 128), (9, 96)):
        x2 = jnp.zeros((1, n2, d2), jnp.float32)
        f2 = make_inv_freq(d2)
        o2 = sinusoidal_embeddings(x2, f2)
        jax.block_until_ready(o2)
        assert o2.shape == (1, n2, d2)
        assert jnp.allclose(o2, ref(n2, f2), rtol=1e-6, atol=1e-6), (n2, d2)

    print("KERNEL_OK")
</pallas_src>

<mosaic_0001>
module attributes {stable_mosaic.version = 11 : i64} {
  func.func @_packed_kernel(%arg0: i32, %arg1: memref<1x128xf32, #tpu.memory_space<vmem>>, %arg2: memref<1x128xf32, #tpu.memory_space<vmem>>, %arg3: memref<2x128xf32, #tpu.memory_space<vmem>>) attributes {dimension_semantics = [#tpu.dimension_semantics<parallel>], iteration_bounds = array<i64: 1>, scalar_prefetch = 0 : i64, scratch_operands = 0 : i64, tpu.core_type = #tpu.core_type<tc>, window_params = [{pipeline_mode = #tpu.pipeline_mode<synchronous>, transform_indices = @transform_0, window_bounds = array<i64: 1, 128>}, {pipeline_mode = #tpu.pipeline_mode<synchronous>, transform_indices = @transform_1, window_bounds = array<i64: 1, 128>}, {transform_indices = @transform_2, window_bounds = array<i64: 2, 128>}]} {
    %c8_i32 = arith.constant 8 : i32
    %0 = arith.muli %arg0, %c8_i32 : i32
    %1 = arith.sitofp %0 : i32 to f32
    %c0 = arith.constant 0 : index
    %c0_0 = arith.constant 0 : index
    %2 = vector.load %arg2[%c0, %c0_0] : memref<1x128xf32, #tpu.memory_space<vmem>>, vector<1x128xf32>
    %3 = vector.broadcast %1 : f32 to vector<1x128xf32>
    %4 = arith.addf %3, %2 : vector<1x128xf32>
    %5 = tpu.iota {dimensions = array<i32: 0>} : vector<2x128xi32>
    %6 = arith.sitofp %5 : vector<2x128xi32> to vector<2x128xf32>
    %cst = arith.constant 4.000000e+00 : f32
    %7 = vector.broadcast %cst : f32 to vector<2x128xf32>
    %8 = arith.mulf %6, %7 : vector<2x128xf32>
    %9 = vector.broadcast %4 : vector<1x128xf32> to vector<2x128xf32>
    %10 = arith.addf %8, %9 : vector<2x128xf32>
    %c0_1 = arith.constant 0 : index
    %c0_2 = arith.constant 0 : index
    %11 = vector.load %arg1[%c0_1, %c0_2] : memref<1x128xf32, #tpu.memory_space<vmem>>, vector<1x128xf32>
    %12 = vector.broadcast %11 : vector<1x128xf32> to vector<2x128xf32>
    %13 = arith.mulf %10, %12 : vector<2x128xf32>
    %c0_3 = arith.constant 0 : index
    %c0_4 = arith.constant 0 : index
    %14 = vector.load %arg3[%c0_3, %c0_4] : memref<2x128xf32, #tpu.memory_space<vmem>>, vector<2x128xf32>
    tpu.vector_store %arg3[%c0_3, %c0_4], %13 {strides = array<i32>} : memref<2x128xf32, #tpu.memory_space<vmem>>, vector<2x128xf32>,
    return
  }
  func.func @transform_0(%arg0: i32) -> (i32, i32) {
    %c0_i32 = arith.constant 0 : i32
    %c0_i32_0 = arith.constant 0 : i32
    %c0_i32_1 = arith.constant 0 : i32
    return %c0_i32, %c0_i32_0 : i32, i32
  }
  func.func @transform_1(%arg0: i32) -> (i32, i32) {
    %c0_i32 = arith.constant 0 : i32
    %c0_i32_0 = arith.constant 0 : i32
    %c0_i32_1 = arith.constant 0 : i32
    return %c0_i32, %c0_i32_0 : i32, i32
  }
  func.func @transform_2(%arg0: i32) -> (i32, i32) {
    %c0_i32 = arith.constant 0 : i32
    %c0_i32_0 = arith.constant 0 : i32
    return %arg0, %c0_i32 : i32, i32
  }
}

</mosaic_0001>

<bundles_post_ra>
// kernel: tpu_custom_call.1
= control target key start
LH: loop header
LB: loop body
LE: loop exit
PB: predicated region body
PF: predicated region fallthrough
CT: control target
= control target key end

     0   :  { %7 = vsyncpa [#allocation3], 0  ;;  %s160_s0 = inlined_call_operand.hbm [shape: f32[1,128], index: 0, kind: input, shape index: {}]   ;;  %s161_s1 = inlined_call_operand.vmem [shape: f32[1,128], index: 1, kind: input, shape index: {}]   ;;  %s162_s2 = inlined_call_operand.hbm [shape: f32[2,128], index: 2, kind: output, shape index: {}]  }
   0x1   :  { %8 = vsyncpa [#allocation4], 0  ;;  %s116_s9 = smov [#allocation2]   ;;  %s68_s13 = scalar_lea.hbm %s160_s0, 16 }
   0x2   :  { %s15_s10 = sshll.u32 %s116_s9, 4  ;;  %p69_p0 = scmp.ne.s32.totalorder %s160_s0, %s68_s13  ;;  %s16_s10 = int_to_ptr.vmem [resolvable:$true] %s15_s10 }
   0x3   :  { %p72_p1 = scmp.lt.u32.totalorder %s68_s13, %s160_s0 }
   0x5   :  { %p74_p2 = pnand %p72_p1, %p69_p0 }
   0x7   :  { %77 = shalt.err (!%p74_p2)
}
   0x8   :  { %s78_s18 = scalar_lea.vmem %s16_s10, 16  ;;  %s82_s19 = scalar_lea.vmem %s16_s10, 32 }
   0x9   :  { %p79_p3 = scmp.ne.s32.totalorder %s16_s10, %s78_s18  ;;  %p83_p4 = scmp.lt.s32.totalorder %s16_s10, %s16_s10 }
   0xa   :  { %p84_p5 = scmp.lt.s32.totalorder %s82_s19, %s78_s18 }
   0xc   :  { %p85_p6 = por %p84_p5, %p83_p4 }
   0xe   :  { %p86_p7 = pnand %p85_p6, %p79_p3 }
  0x10   :  { %89 = shalt.err (!%p86_p7)
}
  0x11   :  { %18 = dma.hbm_to_vmem [thread:$0]  %s160_s0, 16, %s16_s10, [#allocation3]  }
  0x12   :  { %112 = dma.done.wait [#allocation3], 16  }
  0x13   :  { %113 = vsyncadd [#allocation3], 4294967280  ;;  %v29_v0 = vlaneseq  ;;  %v64_v4 = vld [vmem:[%s161_s1] ss:$0 sm:$0xff]  ;;  %s117_s24 = smov [#allocation5]  }
  0x14   :  { %v65_v5 = vld [vmem:[#allocation2] ss:$0 sm:$0xff]  ;;  %s55_s25 = sshll.u32 %s117_s24, 4  ;;  %s56_s25 = int_to_ptr.vmem [resolvable:$true] %s55_s25 }
  0x15   :  { %v30_v1 = vshrl.u32 %v29_v0, 7  ;;  %s90_s26 = scalar_lea.vmem %s56_s25, 32  ;;  %p95_p9 = scmp.lt.s32.totalorder %s56_s25, %s56_s25 }
  0x16   :  { %p91_p8 = scmp.ne.s32.totalorder %s56_s25, %s90_s26  ;;  %p96_p10 = scmp.lt.s32.totalorder %s90_s26, %s90_s26 }
  0x17   :  { %v31_v2 = vcvt.s32.f32 %v30_v1 }
  0x18   :  { %p97_p11 = por %p96_p10, %p95_p9 }
  0x19   :  { %v32_v3 = vmul.f32 4.0, %v31_v2 }
  0x1a   :  { %p98_p12 = pnand %p97_p11, %p91_p8 }
  0x1b   :  { %v39_v6 = vadd.f32 %v64_v4, %v32_v3 }
  0x1d   :  { %v47_v7 = vmul.f32 %v65_v5, %v39_v6 }
  0x1f   :  { %48 = vst [vmem:[#allocation5] sm:$0x3] %v47_v7 }
  0x20   :  { %101 = shalt.err (!%p98_p12)
}
  0x21   :  { %s102_s28 = scalar_lea.hbm %s162_s2, 32 }
  0x22   :  { %p103_p13 = scmp.ne.s32.totalorder %s162_s2, %s102_s28  ;;  %p106_p0 = scmp.lt.u32.totalorder %s102_s28, %s162_s2 }
  0x24   :  { %p108_p1 = pnand %p106_p0, %p103_p13 }
  0x26   :  { %111 = shalt.err (!%p108_p1)
}
  0x27   :  { %58 = dma.vmem_to_hbm [thread:$0]  %s56_s25, 32, %s162_s2, [#allocation4]  }
  0x28   :  { %114 = dma.done.wait [#allocation4], 32  }
  0x29   :  { %115 = vsyncadd [#allocation4], 4294967264 }
  0x2a   :  { %62 = vsyncpa [#allocation3], 1 }
  0x2b   :  { %63 = vsyncpa [#allocation4], 1 }

</bundles_post_ra>
